<compile_context>
chip_gen: v7x
topology: tpu7x:2x2x1
jax: 0.10.0
libtpu: 0.0.40
codegen_flags: <defaults>
</compile_context>

<pallas_src>
import jax
import jax.numpy as jnp
from jax.experimental import pallas as pl
from jax.experimental.pallas import tpu as pltpu


def _flatten_copy_kernel(x_hbm_ref, o_hbm_ref, sem):
    # Single whole-array HBM->HBM DMA; no VMEM staging, no vector-unit work.
    copy = pltpu.make_async_copy(x_hbm_ref, o_hbm_ref, sem)
    copy.start()
    copy.wait()


def flatten(x: jax.Array) -> jax.Array:
    """Pallas equivalent of Flatten.forward: (n, m, 1, 1) -> (n, m)."""
    assert x.ndim == 4 and x.shape[2] == 1 and x.shape[3] == 1, (
        "Flatten expects an (n, m, 1, 1) input, got %s" % (x.shape,)
    )
    n, m = x.shape[:2]

    # Metadata-only squeeze (free in XLA) -- this *is* the Flatten semantics.
    x2d = jnp.reshape(x, (n, m))

    # One direct HBM->HBM copy: both operands stay in HBM (pl.ANY), a single
    # DMA descriptor moves the whole (n, m) buffer.  No grid, no VMEM.
    return pl.pallas_call(
        _flatten_copy_kernel,
        out_shape=jax.ShapeDtypeStruct((n, m), x.dtype),
        in_specs=[pl.BlockSpec(memory_space=pl.ANY)],
        out_specs=pl.BlockSpec(memory_space=pl.ANY),
        scratch_shapes=[pltpu.SemaphoreType.DMA(())],
    )(x2d)


if __name__ == "__main__":
    key = jax.random.PRNGKey(0)

    # Primary case from the module: small (batch, channels, 1, 1).
    x = jax.random.normal(key, (2, 4, 1, 1), dtype=jnp.float32)
    out = jax.block_until_ready(flatten(x))
    ref = jnp.reshape(x, (2, 4))
    assert out.shape == (2, 4)
    assert out.dtype == x.dtype
    assert jnp.array_equal(out, ref)

    # Larger, lane-aligned case.
    x2 = jax.random.normal(key, (64, 128, 1, 1), dtype=jnp.float32)
    out2 = jax.block_until_ready(flatten(x2))
    assert jnp.array_equal(out2, jnp.reshape(x2, (64, 128)))

    # Wide-m, non-f32 case (the shape class that broke the old row-block
    # heuristic); exact byte-for-byte copy, no VMEM involved.
    x3 = jax.random.normal(key, (8, 4096, 1, 1), dtype=jnp.bfloat16)
    out3 = jax.block_until_ready(flatten(x3))
    assert out3.dtype == jnp.bfloat16
    assert jnp.array_equal(out3, jnp.reshape(x3, (8, 4096)))

    print("KERNEL_OK")
</pallas_src>

<mosaic_0001>
module attributes {stable_mosaic.version = 11 : i64} {
  func.func @_flatten_copy_kernel(%arg0: memref<2x4xf32, #tpu.memory_space<any>>, %arg1: memref<2x4xf32, #tpu.memory_space<any>>, %arg2: memref<!tpu.dma_semaphore, #tpu.memory_space<semaphore_mem>>) attributes {dimension_semantics = [], scalar_prefetch = 0 : i64, scratch_operands = 1 : i64, tpu.core_type = #tpu.core_type<tc>} {
    tpu.enqueue_dma source(%arg0 : memref<2x4xf32, #tpu.memory_space<any>>) target(%arg1 : memref<2x4xf32, #tpu.memory_space<any>>) target_semaphore(%arg2 : memref<!tpu.dma_semaphore, #tpu.memory_space<semaphore_mem>>)
    tpu.wait_dma2 semaphore(%arg2 : memref<!tpu.dma_semaphore, #tpu.memory_space<semaphore_mem>>) src(%arg0 : memref<2x4xf32, #tpu.memory_space<any>>) dst(%arg1 : memref<2x4xf32, #tpu.memory_space<any>>)
    return
  }
}

</mosaic_0001>

<bundles_post_ra>
// kernel: tpu_custom_call.1
= control target key start
LH: loop header
LB: loop body
LE: loop exit
PB: predicated region body
PF: predicated region fallthrough
CT: control target
= control target key end

     0   :  { %s34_s6 = smov [#allocation2]   ;;  %s35_s7 = smov [#allocation3]   ;;  %s53_s0 = inlined_call_operand.hbm [shape: f32[2,4], index: 0, kind: input, shape index: {}]   ;;  %s54_s1 = inlined_call_operand.hbm [shape: f32[2,4], index: 1, kind: output, shape index: {}]  }
   0x1   :  { %s36_s8 = smov 0  }
   0x2   :  { %18 = dma.general %s53_s0, 32, %s54_s1, %s34_s6, %s35_s7, [#allocation4], %s36_s8, 0  }
   0x3   :  { %32 = dma.done.wait [#allocation2], 32 }
   0x4   :  { %33 = vsyncadd [#allocation2], 4294967264 }
   0x5   :  { %22 = vsyncmov [#allocation2] }
   0x8   :  { %s23_s13 = vpop.sfrf %22 }
   0x9   :  { %p28_p0 = scmp.ne.s32.totalorder %s23_s13, 0 }
   0xb   :  { %27 = shalt.err (%p28_p0)  }

</bundles_post_ra>
